<compile_context>
chip_gen: v7x
topology: tpu7x:2x2x1
jax: 0.10.0
libtpu: 0.0.40
codegen_flags: <defaults>
</compile_context>

<pallas_src>
import functools

import jax
import jax.numpy as jnp
from jax import lax
from jax.experimental import pallas as pl
from jax.experimental.pallas import tpu as pltpu


def _cdiv(a, b):
    return -(-a // b)


def _round_up(x, m):
    return ((x + m - 1) // m) * m


def _masked_sq_kernel(yp_ref, yt_ref, sq_ref, cnt_ref, *, rows, steps, slab):
    """Accumulate masked squared error + valid counts for one (tr, 128) tile.

    Grid = (core_slices, steps).  Axis 0 is 'parallel' (one slice per
    TensorCore on multi-core parts), axis 1 is the 'arbitrary' row-tile
    reduction.  The (8, 128) f32 output blocks double as the per-core
    accumulators (same output block index for every step of axis 1).
    """
    c = pl.program_id(0)
    t = pl.program_id(1)
    tr = yp_ref.shape[0]

    @pl.when(t == 0)
    def _init():
        sq_ref[...] = jnp.zeros_like(sq_ref)
        cnt_ref[...] = jnp.zeros_like(cnt_ref)

    row0 = (c * steps + t) * tr            # global first row of this tile
    n_slabs = tr // slab
    # Hoisted once per tile: sublane-row iota used by the boundary-masked path.
    row_iota = lax.broadcasted_iota(jnp.int32, (slab, 128), 0)

    def slab_body(bounded):
        def body(i, carry):
            r = pl.multiple_of(i * slab, slab)
            yt = yt_ref[pl.ds(r, slab), :]
            yp = yp_ref[pl.ds(r, slab), :]
            valid = jnp.logical_not(jnp.isnan(yt))
            if bounded:
                # Rows at/after `rows` are out-of-range block filler: drop them.
                valid = jnp.logical_and(valid, row_iota < rows - (row0 + r))
            diff = jnp.where(valid,
                             yp.astype(jnp.float32) - yt.astype(jnp.float32),
                             0.0)
            # Per-sublane partial sums: pure VPU adds into one (8,128) vreg each;
            # the cross-lane (lane -> dim) fold happens in the JAX epilogue.
            sq_ref[...] += (diff * diff).reshape(slab // 8, 8, 128).sum(axis=0)
            cnt_ref[...] += valid.astype(jnp.float32).reshape(slab // 8, 8, 128).sum(axis=0)
            return carry
        return body

    # Interior tiles (the vast majority) skip the row-bounds compare entirely.
    @pl.when(row0 + tr <= rows)
    def _interior():
        lax.fori_loop(0, n_slabs, slab_body(False), 0)

    @pl.when(row0 + tr > rows)
    def _edge():
        lax.fori_loop(0, n_slabs, slab_body(True), 0)


def _jax_combined_loss(y_pred, y_true, weights):
    """Pure-JAX path, faithful to the PyTorch module (used for tiny inputs
    and as the test reference)."""
    mask = jnp.logical_not(jnp.isnan(y_true))
    n_valid = jnp.maximum(jnp.sum(mask, axis=0), 1).astype(jnp.float32)
    yp_m = y_pred.astype(jnp.float32) * mask
    yt_m = jnp.where(mask, y_true.astype(jnp.float32), 0.0)
    dim_means = jnp.sum((yp_m - yt_m) ** 2, axis=0) / n_valid
    valid_dims = jnp.any(mask, axis=0).astype(jnp.float32)
    w = weights.astype(jnp.float32) * valid_dims
    w_sum = jnp.maximum(jnp.sum(w), 1e-8)
    return jnp.sum(dim_means * w) / w_sum, dim_means


def _default_core_slices():
    # v7x has two TensorCores sharing 3.2 TB/s HBM -> split rows across them.
    # Single-TC generations (v5e / v6e) keep a width-1 leading axis so no
    # extra traffic / duplicate finalize is paid.
    # TODO(synk): on v7x verify plain "parallel" actually shards the leading
    # axis across both TensorCores; switch to pltpu.CORE_PARALLEL if not.
    try:
        kind = jax.devices()[0].device_kind.lower()
    except Exception:
        return 1
    return 2 if "v7" in kind else 1


def combined_loss(y_pred, y_true, weights, *, block_rows=8192, core_slices=None,
                  small_input_threshold=1 << 16):
    """NaN-tolerant weighted MSE (CombinedLoss, loss_type='mse').

    y_pred, y_true: [B, D] float (f32 / bf16 are streamed to the kernel as-is).
    weights:        [D] -- the module's `weights` buffer (ones(D) for the
                    default, or caller-normalized weights / weights.sum()).
    Returns (weighted_loss scalar f32, dim_means [D] f32).  Safe to wrap in jax.jit
    (block_rows / core_slices / small_input_threshold must then be static).
    """
    B, D = y_pred.shape
    assert y_true.shape == (B, D), "Predictions and targets must have the same shape"
    if D > 128:
        # TODO(synk): add a [TB, D]-blocked fallback for D > 128 (lanes are
        # already dense there); the packed path assumes 128 % d_pad == 0.
        raise NotImplementedError("combined_loss: D > 128 not supported")
    weights = jnp.asarray(weights, dtype=jnp.float32)

    # Tiny inputs: pallas_call + pad/reshape/epilogue overhead dwarfs the math.
    if B * D <= small_input_threshold:
        return _jax_combined_loss(y_pred, y_true, weights)

    if core_slices is None:
        core_slices = _default_core_slices()

    # Pad dims to a power of two so (flat lane index) % d_pad == dim index.
    # Free for the module default D = 2.
    d_pad = 1 << max(0, (D - 1).bit_length())
    if d_pad != D:
        # TODO(synk): non-power-of-two D still pays one pad copy of both inputs.
        y_pred = jnp.pad(y_pred, ((0, 0), (0, d_pad - D)))
        y_true = jnp.pad(y_true, ((0, 0), (0, d_pad - D)),
                         constant_values=jnp.nan)

    total = B * d_pad
    yp_flat = y_pred.reshape(-1)
    yt_flat = y_true.reshape(-1)
    rem = (-total) % 128
    if rem:
        # Minimal (<128 element) NaN tail pad, only when B*d_pad is not already
        # 128-aligned.  The aligned case is a zero-copy reshape.
        yp_flat = jnp.pad(yp_flat, (0, rem))
        yt_flat = jnp.pad(yt_flat, (0, rem), constant_values=jnp.nan)
    rows = (total + rem) // 128
    yp2 = yp_flat.reshape(rows, 128)
    yt2 = yt_flat.reshape(rows, 128)

    # Tile sizing: no row over-padding; partial/overhanging blocks are handled
    # by the in-kernel row-bound mask.
    core_slices = int(max(1, min(core_slices, rows // 8)))
    rows_per_core = _cdiv(rows, core_slices)
    tr = int(min(_round_up(block_rows, 8), _round_up(rows_per_core, 8)))
    slab = next(s for s in (256, 128, 64, 32, 16, 8) if tr % s == 0)
    steps = _cdiv(rows_per_core, tr)

    in_bytes = y_pred.dtype.itemsize + y_true.dtype.itemsize
    # 2 inputs x 2 pipeline buffers per step + headroom; stays under v7x's
    # 64 MiB physical VMEM and explicitly raises v5e's 16 MiB default limit.
    vmem_limit = int(min(2 * tr * 128 * in_bytes + (16 << 20), 48 << 20))

    kernel = functools.partial(_masked_sq_kernel, rows=rows, steps=steps, slab=slab)
    sq_part, cnt_part = pl.pallas_call(
        kernel,
        out_shape=(
            jax.ShapeDtypeStruct((core_slices * 8, 128), jnp.float32),
            jax.ShapeDtypeStruct((core_slices * 8, 128), jnp.float32),
        ),
        grid=(core_slices, steps),
        in_specs=[
            pl.BlockSpec((tr, 128), lambda c, t: (c * steps + t, 0)),
            pl.BlockSpec((tr, 128), lambda c, t: (c * steps + t, 0)),
        ],
        out_specs=[
            pl.BlockSpec((8, 128), lambda c, t: (c, 0)),
            pl.BlockSpec((8, 128), lambda c, t: (c, 0)),
        ],
        compiler_params=pltpu.CompilerParams(
            dimension_semantics=("parallel", "arbitrary"),
            vmem_limit_bytes=vmem_limit),
        cost_estimate=pl.CostEstimate(
            flops=int(8 * rows * 128),
            transcendentals=0,
            bytes_accessed=int(rows * 128 * in_bytes)),
    )(yp2, yt2)

    # Tiny O(D) epilogue: exact lane->dim fold (lane % d_pad) + clamps/weights.
    sq_lane = jnp.sum(sq_part, axis=0)                       # [128] f32
    cnt_lane = jnp.sum(cnt_part, axis=0)                     # [128] f32
    sq_dims = sq_lane.reshape(128 // d_pad, d_pad).sum(axis=0)[:D]
    cnt_dims = cnt_lane.reshape(128 // d_pad, d_pad).sum(axis=0)[:D]
    n_valid = jnp.maximum(cnt_dims, 1.0)
    dim_means = sq_dims / n_valid
    valid_dims = (cnt_dims > 0.0).astype(jnp.float32)
    w_eff = weights * valid_dims
    w_sum = jnp.maximum(jnp.sum(w_eff), 1e-8)
    weighted = jnp.sum(dim_means * w_eff) / w_sum
    return weighted, dim_means


if __name__ == "__main__":
    def make_inputs(key, B, D, nan_frac=0.25):
        k1, k2, k3 = jax.random.split(key, 3)
        y_pred = jax.random.normal(k1, (B, D), dtype=jnp.float32)
        y_true = jax.random.normal(k2, (B, D), dtype=jnp.float32)
        nan_mask = jax.random.bernoulli(k3, nan_frac, (B, D))
        return y_pred, jnp.where(nan_mask, jnp.nan, y_true)

    def check(loss, dims, yp, yt, w, rtol=1e-4, atol=1e-5):
        ref_loss, ref_dims = _jax_combined_loss(yp, yt, w)
        assert jnp.allclose(loss, ref_loss, atol=atol, rtol=rtol), (loss, ref_loss)
        assert jnp.allclose(dims, ref_dims, atol=atol, rtol=rtol), (dims, ref_dims)

    w2 = jnp.ones((2,), dtype=jnp.float32)

    # 1) Module-default tiny workload (num_dims=2): pure-JAX fast path.
    yp1, yt1 = make_inputs(jax.random.PRNGKey(0), 8, 2)
    loss1, dims1 = combined_loss(yp1, yt1, w2)
    jax.block_until_ready((loss1, dims1))
    check(loss1, dims1, yp1, yt1, w2)

    # 2) Kernel path, 128-aligned flat length (zero-copy reshape), single tile.
    yp2_, yt2_ = make_inputs(jax.random.PRNGKey(1), 4096, 2)
    loss2, dims2 = combined_loss(yp2_, yt2_, w2, small_input_threshold=0)
    jax.block_until_ready((loss2, dims2))
    check(loss2, dims2, yp2_, yt2_, w2)

    # 3) Kernel path, multi-step row-tile reduction (small blocks).
    loss3, dims3 = combined_loss(yp2_, yt2_, w2, small_input_threshold=0,
                                 block_rows=8)
    jax.block_until_ready((loss3, dims3))
    check(loss3, dims3, yp2_, yt2_, w2)

    # 4) Two core slices + partially out-of-range last block (edge masking).
    yp4, yt4 = make_inputs(jax.random.PRNGKey(2), 1500, 2)
    loss4, dims4 = combined_loss(yp4, yt4, w2, small_input_threshold=0,
                                 core_slices=2)
    jax.block_until_ready((loss4, dims4))
    check(loss4, dims4, yp4, yt4, w2)

    # 5) Non-power-of-two D (lane padding) + misaligned flat tail pad.
    yp5, yt5 = make_inputs(jax.random.PRNGKey(3), 1000, 3)
    w3 = jnp.array([0.2, 0.3, 0.5], dtype=jnp.float32)   # pre-normalized buffer
    loss5, dims5 = combined_loss(yp5, yt5, w3, small_input_threshold=0,
                                 block_rows=16)
    jax.block_until_ready((loss5, dims5))
    check(loss5, dims5, yp5, yt5, w3)

    # 6) A dimension with no valid targets (exercises n_valid clamp + valid_dims).
    yp6, yt6 = make_inputs(jax.random.PRNGKey(4), 512, 4)
    yt6 = yt6.at[:, 3].set(jnp.nan)
    w4 = jnp.full((4,), 0.25, dtype=jnp.float32)
    loss6, dims6 = combined_loss(yp6, yt6, w4, small_input_threshold=0)
    jax.block_until_ready((loss6, dims6))
    check(loss6, dims6, yp6, yt6, w4)

    print("KERNEL_OK")
</pallas_src>

<mosaic_0001>
module attributes {stable_mosaic.version = 11 : i64} {
  func.func @_masked_sq_kernel(%arg0: i32, %arg1: i32, %arg2: memref<64x128xf32, #tpu.memory_space<vmem>>, %arg3: memref<64x128xf32, #tpu.memory_space<vmem>>, %arg4: memref<8x128xf32, #tpu.memory_space<vmem>>, %arg5: memref<8x128xf32, #tpu.memory_space<vmem>>) attributes {dimension_semantics = [#tpu.dimension_semantics<parallel>, #tpu.dimension_semantics<arbitrary>], iteration_bounds = array<i64: 1, 1>, scalar_prefetch = 0 : i64, scratch_operands = 0 : i64, tpu.core_type = #tpu.core_type<tc>, window_params = [{transform_indices = @transform_0, window_bounds = array<i64: 64, 128>}, {transform_indices = @transform_1, window_bounds = array<i64: 64, 128>}, {transform_indices = @transform_2, window_bounds = array<i64: 8, 128>}, {transform_indices = @transform_3, window_bounds = array<i64: 8, 128>}]} {
    %c0_i32 = arith.constant 0 : i32
    %0 = arith.cmpi eq, %arg1, %c0_i32 : i32
    %1 = arith.extui %0 : i1 to i32
    %c0_i32_0 = arith.constant 0 : i32
    %2 = arith.cmpi ne, %1, %c0_i32_0 : i32
    scf.if %2 {
      %cst = arith.constant 0.000000e+00 : f32
      %15 = vector.broadcast %cst : f32 to vector<8x128xf32>
      %c0 = arith.constant 0 : index
      %c0_7 = arith.constant 0 : index
      %16 = vector.load %arg4[%c0, %c0_7] : memref<8x128xf32, #tpu.memory_space<vmem>>, vector<8x128xf32>
      tpu.vector_store %arg4[%c0, %c0_7], %15 {strides = array<i32>} : memref<8x128xf32, #tpu.memory_space<vmem>>, vector<8x128xf32>,
      %cst_8 = arith.constant 0.000000e+00 : f32
      %17 = vector.broadcast %cst_8 : f32 to vector<8x128xf32>
      %c0_9 = arith.constant 0 : index
      %c0_10 = arith.constant 0 : index
      %18 = vector.load %arg5[%c0_9, %c0_10] : memref<8x128xf32, #tpu.memory_space<vmem>>, vector<8x128xf32>
      tpu.vector_store %arg5[%c0_9, %c0_10], %17 {strides = array<i32>} : memref<8x128xf32, #tpu.memory_space<vmem>>, vector<8x128xf32>,
    } else {
    }
    %c1_i32 = arith.constant 1 : i32
    %3 = arith.muli %arg0, %c1_i32 : i32
    %4 = arith.addi %3, %arg1 : i32
    %c64_i32 = arith.constant 64 : i32
    %5 = arith.muli %4, %c64_i32 : i32
    %6 = tpu.iota {dimensions = array<i32: 0>} : vector<64x128xi32>
    %c64_i32_1 = arith.constant 64 : i32
    %7 = arith.addi %5, %c64_i32_1 : i32
    %c64_i32_2 = arith.constant 64 : i32
    %8 = arith.cmpi sle, %7, %c64_i32_2 : i32
    %9 = arith.extui %8 : i1 to i32
    %c0_i32_3 = arith.constant 0 : i32
    %10 = arith.cmpi ne, %9, %c0_i32_3 : i32
    scf.if %10 {
      %c0_i32_7 = arith.constant 0 : i32
      %c64_i32_8 = arith.constant 64 : i32
      %15 = arith.muli %c0_i32_7, %c64_i32_8 : i32
      %16 = tpu.assume_multiple %15, 64 : i32
      %17 = arith.index_cast %16 : i32 to index
      %c0 = arith.constant 0 : index
      %18 = vector.load %arg3[%17, %c0] : memref<64x128xf32, #tpu.memory_space<vmem>>, vector<64x128xf32>
      %19 = arith.index_cast %16 : i32 to index
      %c0_9 = arith.constant 0 : index
      %20 = vector.load %arg2[%19, %c0_9] : memref<64x128xf32, #tpu.memory_space<vmem>>, vector<64x128xf32>
      %21 = arith.cmpf one, %18, %18 : vector<64x128xf32>
      %cst = arith.constant dense<true> : vector<64x128xi1>
      %22 = arith.xori %21, %cst : vector<64x128xi1>
      %23 = arith.subf %20, %18 : vector<64x128xf32>
      %cst_10 = arith.constant 0.000000e+00 : f32
      %24 = vector.broadcast %cst_10 : f32 to vector<64x128xf32>
      %25 = arith.select %22, %23, %24 : vector<64x128xi1>, vector<64x128xf32>
      %c0_11 = arith.constant 0 : index
      %c0_12 = arith.constant 0 : index
      %26 = vector.load %arg4[%c0_11, %c0_12] : memref<8x128xf32, #tpu.memory_space<vmem>>, vector<8x128xf32>
      %27 = arith.mulf %25, %25 : vector<64x128xf32>
      %28 = vector.shape_cast %27 : vector<64x128xf32> to vector<8x8x128xf32>
      %cst_13 = arith.constant dense<0.000000e+00> : vector<8x128xf32>
      %29 = vector.multi_reduction <add>, %28, %cst_13 [0] : vector<8x8x128xf32> to vector<8x128xf32>
      %30 = arith.addf %26, %29 : vector<8x128xf32>
      %c0_14 = arith.constant 0 : index
      %c0_15 = arith.constant 0 : index
      %31 = vector.load %arg4[%c0_14, %c0_15] : memref<8x128xf32, #tpu.memory_space<vmem>>, vector<8x128xf32>
      tpu.vector_store %arg4[%c0_14, %c0_15], %30 {strides = array<i32>} : memref<8x128xf32, #tpu.memory_space<vmem>>, vector<8x128xf32>,
      %c0_16 = arith.constant 0 : index
      %c0_17 = arith.constant 0 : index
      %32 = vector.load %arg5[%c0_16, %c0_17] : memref<8x128xf32, #tpu.memory_space<vmem>>, vector<8x128xf32>
      %33 = arith.extui %22 : vector<64x128xi1> to vector<64x128xi32>
      %34 = arith.sitofp %33 : vector<64x128xi32> to vector<64x128xf32>
      %35 = vector.shape_cast %34 : vector<64x128xf32> to vector<8x8x128xf32>
      %cst_18 = arith.constant dense<0.000000e+00> : vector<8x128xf32>
      %36 = vector.multi_reduction <add>, %35, %cst_18 [0] : vector<8x8x128xf32> to vector<8x128xf32>
      %37 = arith.addf %32, %36 : vector<8x128xf32>
      %c0_19 = arith.constant 0 : index
      %c0_20 = arith.constant 0 : index
      %38 = vector.load %arg5[%c0_19, %c0_20] : memref<8x128xf32, #tpu.memory_space<vmem>>, vector<8x128xf32>
      tpu.vector_store %arg5[%c0_19, %c0_20], %37 {strides = array<i32>} : memref<8x128xf32, #tpu.memory_space<vmem>>, vector<8x128xf32>,
      %c1_i32_21 = arith.constant 1 : i32
    } else {
    }
    %c64_i32_4 = arith.constant 64 : i32
    %11 = arith.addi %5, %c64_i32_4 : i32
    %c64_i32_5 = arith.constant 64 : i32
    %12 = arith.cmpi sgt, %11, %c64_i32_5 : i32
    %13 = arith.extui %12 : i1 to i32
    %c0_i32_6 = arith.constant 0 : i32
    %14 = arith.cmpi ne, %13, %c0_i32_6 : i32
    scf.if %14 {
      %c0_i32_7 = arith.constant 0 : i32
      %c64_i32_8 = arith.constant 64 : i32
      %15 = arith.muli %c0_i32_7, %c64_i32_8 : i32
      %16 = tpu.assume_multiple %15, 64 : i32
      %17 = arith.index_cast %16 : i32 to index
      %c0 = arith.constant 0 : index
      %18 = vector.load %arg3[%17, %c0] : memref<64x128xf32, #tpu.memory_space<vmem>>, vector<64x128xf32>
      %19 = arith.index_cast %16 : i32 to index
      %c0_9 = arith.constant 0 : index
      %20 = vector.load %arg2[%19, %c0_9] : memref<64x128xf32, #tpu.memory_space<vmem>>, vector<64x128xf32>
      %21 = arith.cmpf one, %18, %18 : vector<64x128xf32>
      %cst = arith.constant dense<true> : vector<64x128xi1>
      %22 = arith.xori %21, %cst : vector<64x128xi1>
      %23 = arith.addi %5, %16 : i32
      %c64_i32_10 = arith.constant 64 : i32
      %24 = arith.subi %c64_i32_10, %23 : i32
      %25 = vector.broadcast %24 : i32 to vector<64x128xi32>
      %26 = arith.cmpi slt, %6, %25 : vector<64x128xi32>
      %27 = arith.andi %22, %26 : vector<64x128xi1>
      %28 = arith.subf %20, %18 : vector<64x128xf32>
      %cst_11 = arith.constant 0.000000e+00 : f32
      %29 = vector.broadcast %cst_11 : f32 to vector<64x128xf32>
      %30 = arith.select %27, %28, %29 : vector<64x128xi1>, vector<64x128xf32>
      %c0_12 = arith.constant 0 : index
      %c0_13 = arith.constant 0 : index
      %31 = vector.load %arg4[%c0_12, %c0_13] : memref<8x128xf32, #tpu.memory_space<vmem>>, vector<8x128xf32>
      %32 = arith.mulf %30, %30 : vector<64x128xf32>
      %33 = vector.shape_cast %32 : vector<64x128xf32> to vector<8x8x128xf32>
      %cst_14 = arith.constant dense<0.000000e+00> : vector<8x128xf32>
      %34 = vector.multi_reduction <add>, %33, %cst_14 [0] : vector<8x8x128xf32> to vector<8x128xf32>
      %35 = arith.addf %31, %34 : vector<8x128xf32>
      %c0_15 = arith.constant 0 : index
      %c0_16 = arith.constant 0 : index
      %36 = vector.load %arg4[%c0_15, %c0_16] : memref<8x128xf32, #tpu.memory_space<vmem>>, vector<8x128xf32>
      tpu.vector_store %arg4[%c0_15, %c0_16], %35 {strides = array<i32>} : memref<8x128xf32, #tpu.memory_space<vmem>>, vector<8x128xf32>,
      %c0_17 = arith.constant 0 : index
      %c0_18 = arith.constant 0 : index
      %37 = vector.load %arg5[%c0_17, %c0_18] : memref<8x128xf32, #tpu.memory_space<vmem>>, vector<8x128xf32>
      %38 = arith.extui %27 : vector<64x128xi1> to vector<64x128xi32>
      %39 = arith.sitofp %38 : vector<64x128xi32> to vector<64x128xf32>
      %40 = vector.shape_cast %39 : vector<64x128xf32> to vector<8x8x128xf32>
      %cst_19 = arith.constant dense<0.000000e+00> : vector<8x128xf32>
      %41 = vector.multi_reduction <add>, %40, %cst_19 [0] : vector<8x8x128xf32> to vector<8x128xf32>
      %42 = arith.addf %37, %41 : vector<8x128xf32>
      %c0_20 = arith.constant 0 : index
      %c0_21 = arith.constant 0 : index
      %43 = vector.load %arg5[%c0_20, %c0_21] : memref<8x128xf32, #tpu.memory_space<vmem>>, vector<8x128xf32>
      tpu.vector_store %arg5[%c0_20, %c0_21], %42 {strides = array<i32>} : memref<8x128xf32, #tpu.memory_space<vmem>>, vector<8x128xf32>,
      %c1_i32_22 = arith.constant 1 : i32
    } else {
    }
    return
  }
  func.func @transform_0(%arg0: i32, %arg1: i32) -> (i32, i32) {
    %c1_i32 = arith.constant 1 : i32
    %0 = arith.muli %arg0, %c1_i32 : i32
    %1 = arith.addi %0, %arg1 : i32
    %c0_i32 = arith.constant 0 : i32
    %c0_i32_0 = arith.constant 0 : i32
    return %1, %c0_i32 : i32, i32
  }
  func.func @transform_1(%arg0: i32, %arg1: i32) -> (i32, i32) {
    %c1_i32 = arith.constant 1 : i32
    %0 = arith.muli %arg0, %c1_i32 : i32
    %1 = arith.addi %0, %arg1 : i32
    %c0_i32 = arith.constant 0 : i32
    %c0_i32_0 = arith.constant 0 : i32
    return %1, %c0_i32 : i32, i32
  }
  func.func @transform_2(%arg0: i32, %arg1: i32) -> (i32, i32) {
    %c0_i32 = arith.constant 0 : i32
    %c0_i32_0 = arith.constant 0 : i32
    return %arg0, %c0_i32 : i32, i32
  }
  func.func @transform_3(%arg0: i32, %arg1: i32) -> (i32, i32) {
    %c0_i32 = arith.constant 0 : i32
    %c0_i32_0 = arith.constant 0 : i32
    return %arg0, %c0_i32 : i32, i32
  }
}

</mosaic_0001>

<bundles_post_ra>
// kernel: tpu_custom_call.1
= control target key start
LH: loop header
LB: loop body
LE: loop exit
PB: predicated region body
PF: predicated region fallthrough
CT: control target
= control target key end

     0   :  { %9 = vsyncpa [#allocation3], 0  ;;  %s557_s0 = inlined_call_operand.hbm [shape: f32[64,128], index: 0, kind: input, shape index: {}]   ;;  %s558_s1 = inlined_call_operand.hbm [shape: f32[64,128], index: 1, kind: input, shape index: {}]   ;;  %s559_s2 = inlined_call_operand.hbm [shape: f32[8,128], index: 2, kind: output, shape index: {0}]   ;;  %s560_s3 = inlined_call_operand.hbm [shape: f32[8,128], index: 3, kind: output, shape index: {1}]  }
   0x1   :  { %10 = vsyncpa [#allocation6], 0 }
   0x2   :  { %11 = vsyncpa [#allocation4], 0 }
   0x3   :  { %12 = vsyncpa [#allocation9], 0  ;;  %s434_s12 = smov [#allocation2]   ;;  %s338_s16 = scalar_lea.hbm %s557_s0, 1024 }
   0x4   :  { %s22_s13 = sshll.u32 %s434_s12, 4  ;;  %p339_p0 = scmp.ne.s32.totalorder %s557_s0, %s338_s16  ;;  %s23_s13 = int_to_ptr.vmem [resolvable:$true] %s22_s13 }
   0x5   :  { %p342_p1 = scmp.lt.u32.totalorder %s338_s16, %s557_s0 }
   0x7   :  { %p344_p2 = pnand %p342_p1, %p339_p0 }
   0x9   :  { %347 = shalt.err (!%p344_p2)
}
   0xa   :  { %s348_s21 = scalar_lea.vmem %s23_s13, 1024  ;;  %p353_p4 = scmp.lt.s32.totalorder %s23_s13, %s23_s13 }
   0xb   :  { %p349_p3 = scmp.ne.s32.totalorder %s23_s13, %s348_s21  ;;  %p354_p5 = scmp.lt.s32.totalorder %s348_s21, %s348_s21 }
   0xd   :  { %p355_p6 = por %p354_p5, %p353_p4 }
   0xf   :  { %p356_p7 = pnand %p355_p6, %p349_p3 }
  0x11   :  { %359 = shalt.err (!%p356_p7)
}
  0x12   :  { %s435_s22 = smov 128   ;;  %s436_s23 = smov 8  }
  0x13   :  { %28 = dma.hbm_to_vmem [thread:$0]  %s557_s0, 1024, %s23_s13, [#allocation3], %s435_s22, %s435_s22, %s436_s23  }
  0x14   :  { %s437_s26 = smov [#allocation5]   ;;  %s360_s30 = scalar_lea.hbm %s558_s1, 1024 }
  0x15   :  { %s38_s27 = sshll.u32 %s437_s26, 4  ;;  %p361_p8 = scmp.ne.s32.totalorder %s558_s1, %s360_s30  ;;  %s39_s27 = int_to_ptr.vmem [resolvable:$true] %s38_s27 }
  0x16   :  { %p364_p9 = scmp.lt.u32.totalorder %s360_s30, %s558_s1 }
  0x18   :  { %p366_p10 = pnand %p364_p9, %p361_p8 }
  0x1a   :  { %369 = shalt.err (!%p366_p10)
}
  0x1b   :  { %s370_s8 = scalar_lea.vmem %s39_s27, 1024  ;;  %p375_p12 = scmp.lt.s32.totalorder %s39_s27, %s39_s27 }
  0x1c   :  { %p371_p11 = scmp.ne.s32.totalorder %s39_s27, %s370_s8  ;;  %p376_p13 = scmp.lt.s32.totalorder %s370_s8, %s370_s8 }
  0x1e   :  { %p377_p0 = por %p376_p13, %p375_p12 }
  0x20   :  { %p378_p1 = pnand %p377_p0, %p371_p11 }
  0x22   :  { %381 = shalt.err (!%p378_p1)
}
  0x23   :  { %44 = dma.hbm_to_vmem [thread:$0]  %s558_s1, 1024, %s39_s27, [#allocation6], %s435_s22, %s435_s22, %s436_s23  }
  0x24   :  { %426 = dma.done.wait [#allocation3], 1024  }
  0x25   :  { %427 = vsyncadd [#allocation3], 4294966272 }
  0x26   :  { %428 = dma.done.wait [#allocation6], 1024  }
  0x27   :  { %429 = vsyncadd [#allocation6], 4294966272  ;;  %v77_v0 = vld [vmem:[#allocation5] sm:$0xff]  ;;  %v78_v1 = vld [vmem:[#allocation5 + $0x8] sm:$0xff]  ;;  %vm438_vm6 = vmmov 1   ;;  %v439_v21 = vmov 0.0  }
  0x28   :  { %v79_v2 = vld [vmem:[#allocation5 + $0x10] sm:$0xff]  ;;  %v80_v3 = vld [vmem:[#allocation5 + $0x18] sm:$0xff]  ;;  %v81_v4 = vld [vmem:[#allocation5 + $0x20] sm:$0xff]  ;;  %vm93_vm0 = vcmp.ne.f32.partialorder %v77_v0, %v77_v0  ;;  %vm94_vm1 = vcmp.ne.f32.partialorder %v78_v1, %v78_v1  ;;  %s440_s1 = smov [#allocation8]   ;;  %s441_s11 = smov [#allocation7]  }
  0x29   :  { %v82_v5 = vld [vmem:[#allocation5 + $0x28] sm:$0xff]  ;;  %v83_v6 = vld [vmem:[#allocation5 + $0x30] sm:$0xff]  ;;  %v85_v7 = vld [vmem:[#allocation2] sm:$0xff]  ;;  %vm95_vm2 = vcmp.ne.f32.partialorder %v79_v2, %v79_v2  ;;  %vm96_vm3 = vcmp.ne.f32.partialorder %v80_v3, %v80_v3  ;;  %vm97_vm4 = vcmp.ne.f32.partialorder %v81_v4, %v81_v4  ;;  %s300_s10 = sshll.u32 %s440_s1, 4  ;;  %s290_s12 = sshll.u32 %s441_s11, 4  ;;  %s301_s10 = int_to_ptr.vmem [resolvable:$true] %s300_s10  ;;  %s291_s12 = int_to_ptr.vmem [resolvable:$true] %s290_s12 }
  0x2a   :  { %v86_v8 = vld [vmem:[#allocation2 + $0x8] sm:$0xff]  ;;  %v87_v9 = vld [vmem:[#allocation2 + $0x10] sm:$0xff]  ;;  %v88_v10 = vld [vmem:[#allocation2 + $0x18] sm:$0xff]  ;;  %v109_v11 = vsub.f32 %v85_v7, %v77_v0  ;;  %vm98_vm5 = vcmp.ne.f32.partialorder %v82_v5, %v82_v5  ;;  %vm99_vm8 = vcmp.ne.f32.partialorder %v83_v6, %v83_v6  ;;  %s382_s13 = scalar_lea.vmem %s301_s10, 128  ;;  %p387_p3 = scmp.lt.s32.totalorder %s301_s10, %s301_s10 }
  0x2b   :  { %v89_v12 = vld [vmem:[#allocation2 + $0x20] sm:$0xff]  ;;  %v90_v13 = vld [vmem:[#allocation2 + $0x28] sm:$0xff]  ;;  %v110_v14 = vsub.f32 %v86_v8, %v78_v1  ;;  %v111_v15 = vsub.f32 %v87_v9, %v79_v2  ;;  %vm101_vm7 = vmxor %vm93_vm0, %vm438_vm6  ;;  %v112_v16 = vsub.f32 %v88_v10, %v80_v3  ;;  %p383_p2 = scmp.ne.s32.totalorder %s301_s10, %s382_s13  ;;  %p388_p4 = scmp.lt.s32.totalorder %s382_s13, %s382_s13 }
  0x2c   :  { %v84_v17 = vld [vmem:[#allocation5 + $0x38] sm:$0xff]  ;;  %v91_v18 = vld [vmem:[#allocation2 + $0x30] sm:$0xff]  ;;  %vm102_vm9 = vmxor %vm94_vm1, %vm438_vm6  ;;  %v113_v19 = vsub.f32 %v89_v12, %v81_v4  ;;  %v117_v20 = vsel %vm101_vm7, %v109_v11, 0.0  ;;  %v314_v22 = vsel %vm101_vm7, 1.0, %v439_v21  ;;  %v114_v23 = vsub.f32 %v90_v13, %v82_v5 }
  0x2d   :  { %vm103_vm10 = vmxor %vm95_vm2, %vm438_vm6  ;;  %v118_v24 = vsel %vm102_vm9, %v110_v14, 0.0  ;;  %v126_v25 = vmul.f32 %v117_v20, %v117_v20  ;;  %v315_v26 = vsel %vm102_vm9, 1.0, %v439_v21  ;;  %v92_v27 = vld [vmem:[#allocation2 + $0x38] sm:$0xff]  ;;  %vm100_vm12 = vcmp.ne.f32.partialorder %v84_v17, %v84_v17  ;;  %p389_p5 = por %p388_p4, %p387_p3 }
  0x2e   :  { %vm104_vm11 = vmxor %vm96_vm3, %vm438_vm6  ;;  %v119_v28 = vsel %vm103_vm10, %v111_v15, 0.0  ;;  %v127_v29 = vmul.f32 %v118_v24, %v118_v24  ;;  %v316_v30 = vsel %vm103_vm10, 1.0, %v439_v21  ;;  %v160_v31 = vadd.f32 %v315_v26, %v314_v22 }
  0x2f   :  { %vm496_vm13 = vmxor %vm97_vm4, %vm438_vm6  ;;  %v115_v33 = vsub.f32 %v91_v18, %v83_v6  ;;  %v120_v34 = vsel %vm104_vm11, %v112_v16, 0.0  ;;  %v128_v35 = vmul.f32 %v119_v28, %v119_v28  ;;  %v317_v40 = vsel %vm104_vm11, 1.0, %v439_v21  ;;  %p390_p6 = pnand %p389_p5, %p383_p2 }
  0x30   :  { %vm502_vm14 = vmxor %vm98_vm5, %vm438_vm6  ;;  %v121_v37 = vsel %vm496_vm13, %v113_v19, 0.0  ;;  %v129_v38 = vmul.f32 %v120_v34, %v120_v34  ;;  %v134_v39 = vadd.f32 %v127_v29, %v126_v25  ;;  %v116_v42 = vsub.f32 %v92_v27, %v84_v17 }
  0x31   :  { %vm510_vm15 = vmxor %vm99_vm8, %vm438_vm6  ;;  %v122_v43 = vsel %vm502_vm14, %v114_v23, 0.0  ;;  %v161_v44 = vadd.f32 %v316_v30, %v160_v31  ;;  %v130_v46 = vmul.f32 %v121_v37, %v121_v37  ;;  %v318_v48 = vsel %vm496_vm13, 1.0, %v439_v21 }
  0x32   :  { %vm517_vm0 = vmxor %vm100_vm12, %vm438_vm6  ;;  %v135_v47 = vadd.f32 %v134_v39, %v128_v35  ;;  %v123_v49 = vsel %vm510_vm15, %v115_v33, 0.0  ;;  %v131_v51 = vmul.f32 %v122_v43, %v122_v43  ;;  %v319_v53 = vsel %vm502_vm14, 1.0, %v439_v21 }
  0x33   :  { %v162_v50 = vadd.f32 %v317_v40, %v161_v44  ;;  %v124_v54 = vsel %vm517_vm0, %v116_v42, 0.0  ;;  %v132_v56 = vmul.f32 %v123_v49, %v123_v49  ;;  %v320_v58 = vsel %vm510_vm15, 1.0, %v439_v21 }
  0x34   :  { %v136_v52 = vadd.f32 %v135_v47, %v129_v38  ;;  %v133_v60 = vmul.f32 %v124_v54, %v124_v54  ;;  %v321_v62 = vsel %vm517_vm0, 1.0, %v439_v21 }
  0x35   :  { %v163_v55 = vadd.f32 %v318_v48, %v162_v50 }
  0x36   :  { %v137_v57 = vadd.f32 %v136_v52, %v130_v46 }
  0x37   :  { %v164_v59 = vadd.f32 %v319_v53, %v163_v55 }
  0x38   :  { %v138_v61 = vadd.f32 %v137_v57, %v131_v51 }
  0x39   :  { %v165_v63 = vadd.f32 %v320_v58, %v164_v59 }
  0x3a   :  { %v139_v0 = vadd.f32 %v138_v61, %v132_v56 }
  0x3b   :  { %v166_v1 = vadd.f32 %v321_v62, %v165_v63 }
  0x3c   :  { %v140_v2 = vadd.f32 %v139_v0, %v133_v60 }
  0x3d   :  { %168 = vst [vmem:[#allocation8] sm:$0xff] %v166_v1 }
  0x3e   :  { %142 = vst [vmem:[#allocation7] sm:$0xff] %v140_v2 }
  0x3f   :  { %393 = shalt.err (!%p390_p6)
}
  0x40   :  { %s394_s16 = scalar_lea.hbm %s560_s3, 128 }
  0x41   :  { %p395_p7 = scmp.ne.s32.totalorder %s560_s3, %s394_s16  ;;  %p398_p8 = scmp.lt.u32.totalorder %s394_s16, %s560_s3 }
  0x43   :  { %p400_p9 = pnand %p398_p8, %p395_p7 }
  0x45   :  { %403 = shalt.err (!%p400_p9)
}
  0x46   :  { %303 = dma.vmem_to_hbm [thread:$0]  %s301_s10, 128, %s560_s3, [#allocation9]  }
  0x47   :  { %s404_s23 = scalar_lea.vmem %s291_s12, 128  ;;  %p409_p11 = scmp.lt.s32.totalorder %s291_s12, %s291_s12 }
  0x48   :  { %p405_p10 = scmp.ne.s32.totalorder %s291_s12, %s404_s23  ;;  %p410_p12 = scmp.lt.s32.totalorder %s404_s23, %s404_s23 }
  0x4a   :  { %p411_p13 = por %p410_p12, %p409_p11 }
  0x4c   :  { %p412_p0 = pnand %p411_p13, %p405_p10 }
  0x4e   :  { %415 = shalt.err (!%p412_p0)
}
  0x4f   :  { %s416_s26 = scalar_lea.hbm %s559_s2, 128 }
  0x50   :  { %p417_p1 = scmp.ne.s32.totalorder %s559_s2, %s416_s26  ;;  %p420_p2 = scmp.lt.u32.totalorder %s416_s26, %s559_s2 }
  0x52   :  { %p422_p3 = pnand %p420_p2, %p417_p1 }
  0x54   :  { %425 = shalt.err (!%p422_p3)
}
  0x55   :  { %293 = dma.vmem_to_hbm [thread:$0]  %s291_s12, 128, %s559_s2, [#allocation4]  }
  0x56   :  { %430 = dma.done.wait [#allocation4], 128  }
  0x57   :  { %431 = vsyncadd [#allocation4], 4294967168 }
  0x58   :  { %432 = dma.done.wait [#allocation9], 128  }
  0x59   :  { %433 = vsyncadd [#allocation9], 4294967168 }
  0x5a   :  { %310 = vsyncpa [#allocation3], 1 }
  0x5b   :  { %311 = vsyncpa [#allocation6], 1 }
  0x5c   :  { %312 = vsyncpa [#allocation4], 1 }
  0x5d   :  { %313 = vsyncpa [#allocation9], 1 }

</bundles_post_ra>
